<compile_context>
chip_gen: v7x
topology: tpu7x:2x2x1
jax: 0.10.0
libtpu: 0.0.40
codegen_flags: <defaults>
</compile_context>

<pallas_src>
import functools

import jax
import jax.numpy as jnp
import numpy as np
from jax.experimental import pallas as pl
from jax.experimental.pallas import tpu as pltpu


def _iou_partial_kernel(x_ref, t_ref, inter_ref, union_ref, *,
                        cls, num_classes, rows_per_block, hw, hw_pad):
    """Exact int32 [intersection, union] partials for one (batch, spatial block)."""
    # x_ref: (C, R, 128) float ; t_ref: (R, 128) int ; outputs: (1, 128) int32.
    x_cls = x_ref[cls]                                       # static channel slice

    # seg_m == (argmax over channels == cls), first-occurrence tie-break
    # (torch.argmax semantics): x[cls] strictly beats every earlier channel and
    # is >= every later channel.  C is small & static -> fully unrolled.
    seg_m = None
    for c in range(num_classes):
        if c == cls:
            continue
        x_c = x_ref[c]
        beats = (x_cls > x_c) if c < cls else (x_cls >= x_c)
        seg_m = beats if seg_m is None else jnp.logical_and(seg_m, beats)
    if seg_m is None:                                        # degenerate C == 1
        seg_m = jnp.ones(x_cls.shape, dtype=jnp.bool_)

    tgt_m = t_ref[...] == cls                                # native target dtype

    # Padded tail lanes are neutralized in the wrapper (target fill != cls, and
    # for C >= 2 the cls channel strictly loses at padded positions), so no
    # per-step mask is needed on the hot path.  Only C == 1 with padding needs
    # an explicit validity mask.
    if hw_pad != hw and num_classes == 1:
        s_idx = pl.program_id(1)
        row = jax.lax.broadcasted_iota(jnp.int32, x_cls.shape, 0)
        lane = jax.lax.broadcasted_iota(jnp.int32, x_cls.shape, 1)
        pos = (s_idx * rows_per_block + row) * 128 + lane
        seg_m = jnp.logical_and(seg_m, pos < hw)

    inter = jnp.sum(jnp.logical_and(seg_m, tgt_m).astype(jnp.int32))
    union = jnp.sum(jnp.logical_or(seg_m, tgt_m).astype(jnp.int32))

    # Lane-dense (1, 128) partial outputs (scalar broadcast across the lanes).
    inter_ref[...] = jnp.zeros((1, 128), jnp.int32) + inter
    union_ref[...] = jnp.zeros((1, 128), jnp.int32) + union


# ~4 MiB of logits per grid step: big enough to reach ~85-90% of the HBM
# roofline on v5e/v6e/v7x, small enough that the double-buffered working set
# (2 x logits block + 2 x target block, ~10 MiB at C=4/f32) fits every
# generation's scoped-VMEM budget.
_LOGITS_BLOCK_BYTES = 4 * 1024 * 1024


def iou_score(logits: jax.Array, target: jax.Array, cls: int) -> jax.Array:
    """IoU of (argmax(logits, axis=1) == cls) vs (target == cls). Returns f32 scalar."""
    N, C, H, W = logits.shape
    HW = H * W
    itemsize = jnp.dtype(logits.dtype).itemsize

    # --- block-size selection: rows of 128 lanes per spatial block ------------
    rows_needed = (HW + 127) // 128
    bytes_per_row = C * 128 * itemsize
    rows_fit = max(8, (_LOGITS_BLOCK_BYTES // bytes_per_row) // 8 * 8)
    if rows_fit >= rows_needed:
        rows_per_block, num_s = rows_needed, 1       # single block == full extent
    else:
        rows_per_block = rows_fit                    # multiple of 8
        num_s = (rows_needed + rows_per_block - 1) // rows_per_block
    rows_total = rows_per_block * num_s
    HW_pad = rows_total * 128
    pad = HW_pad - HW

    # --- lane-dense layout + one-time neutral padding --------------------------
    x = logits.reshape(N, C, HW)
    t = target.reshape(N, HW)                        # keep native integer dtype
    if pad > 0:
        x_pad = jnp.zeros((N, C, pad), x.dtype)
        if C >= 2:
            # padded positions: channel `cls` strictly loses -> argmax != cls
            x_pad = x_pad.at[:, cls, :].set(-1.0)
        x = jnp.concatenate([x, x_pad], axis=-1)
        fill = cls ^ 1                               # any value != cls, >= 0
        t = jnp.concatenate([t, jnp.full((N, pad), fill, t.dtype)], axis=-1)
    x = x.reshape(N, C, rows_total, 128)
    t = t.reshape(N, rows_total, 128)

    G = N * num_s
    kernel = functools.partial(
        _iou_partial_kernel, cls=int(cls), num_classes=C,
        rows_per_block=rows_per_block, hw=HW, hw_pad=HW_pad)

    grid_spec = pltpu.PrefetchScalarGridSpec(
        num_scalar_prefetch=0,
        grid=(N, num_s),
        in_specs=[
            # batch squeezed; (C, R, 128) logits block per step
            pl.BlockSpec((None, C, rows_per_block, 128), lambda b, s: (b, 0, s, 0)),
            # batch squeezed; (R, 128) label block per step
            pl.BlockSpec((None, rows_per_block, 128), lambda b, s: (b, s, 0)),
        ],
        out_specs=[
            pl.BlockSpec((None, 1, 128), lambda b, s: (b * num_s + s, 0, 0)),
            pl.BlockSpec((None, 1, 128), lambda b, s: (b * num_s + s, 0, 0)),
        ],
    )

    inter_p, union_p = pl.pallas_call(
        kernel,
        out_shape=(
            jax.ShapeDtypeStruct((G, 1, 128), jnp.int32),
            jax.ShapeDtypeStruct((G, 1, 128), jnp.int32),
        ),
        grid_spec=grid_spec,
        compiler_params=pltpu.CompilerParams(
            # independent per-step partials -> both axes parallel (megacore on v7x)
            dimension_semantics=("parallel", "parallel"),
            # covers v5e's 16 MiB scoped default; safe within v7x's 64 MiB VMEM
            vmem_limit_bytes=32 * 1024 * 1024,
        ),
    )(x, t)

    inter_tot = jnp.sum(inter_p[:, 0, 0]).astype(jnp.float32)
    union_tot = jnp.sum(union_p[:, 0, 0]).astype(jnp.float32)
    return inter_tot / (union_tot + 1e-8)


if __name__ == "__main__":
    key = jax.random.PRNGKey(0)
    k1, k2 = jax.random.split(key)

    N, C, H, W = 2, 4, 16, 16
    logits = jax.random.normal(k1, (N, C, H, W), dtype=jnp.float32)
    target = jax.random.randint(k2, (N, H, W), 0, C, dtype=jnp.int32)
    cls = 1

    result = jax.block_until_ready(iou_score(logits, target, cls))

    # Pure-JAX reference for sanity check.
    seg = jnp.argmax(logits, axis=1)
    si = seg == cls
    ti = target == cls
    ref = jnp.sum(jnp.logical_and(si, ti).astype(jnp.float32)) / (
        jnp.sum(jnp.logical_or(si, ti).astype(jnp.float32)) + 1e-8
    )

    assert np.allclose(np.asarray(result), np.asarray(ref), rtol=1e-6, atol=1e-6), (
        result, ref)
    print("KERNEL_OK")
</pallas_src>

<mosaic_0001>
module attributes {stable_mosaic.version = 11 : i64} {
  func.func @_iou_partial_kernel(%arg0: i32, %arg1: i32, %arg2: memref<1x4x2x128xf32, #tpu.memory_space<vmem>>, %arg3: memref<1x2x128xi32, #tpu.memory_space<vmem>>, %arg4: memref<1x1x128xi32, #tpu.memory_space<vmem>>, %arg5: memref<1x1x128xi32, #tpu.memory_space<vmem>>) attributes {dimension_semantics = [#tpu.dimension_semantics<parallel>, #tpu.dimension_semantics<parallel>], iteration_bounds = array<i64: 2, 1>, scalar_prefetch = 0 : i64, scratch_operands = 0 : i64, tpu.core_type = #tpu.core_type<tc>, window_params = [{transform_indices = @transform_0, window_bounds = array<i64: 1, 4, 2, 128>}, {transform_indices = @transform_1, window_bounds = array<i64: 1, 2, 128>}, {transform_indices = @transform_2, window_bounds = array<i64: 1, 1, 128>}, {transform_indices = @transform_3, window_bounds = array<i64: 1, 1, 128>}]} {
    %c0 = arith.constant 0 : index
    %c1 = arith.constant 1 : index
    %c0_0 = arith.constant 0 : index
    %c0_1 = arith.constant 0 : index
    %0 = vector.load %arg2[%c0, %c1, %c0_0, %c0_1] : memref<1x4x2x128xf32, #tpu.memory_space<vmem>>, vector<1x1x2x128xf32>
    %1 = vector.shape_cast %0 : vector<1x1x2x128xf32> to vector<2x128xf32>
    %c0_2 = arith.constant 0 : index
    %c0_3 = arith.constant 0 : index
    %c0_4 = arith.constant 0 : index
    %c0_5 = arith.constant 0 : index
    %2 = vector.load %arg2[%c0_2, %c0_3, %c0_4, %c0_5] : memref<1x4x2x128xf32, #tpu.memory_space<vmem>>, vector<1x1x2x128xf32>
    %3 = vector.shape_cast %2 : vector<1x1x2x128xf32> to vector<2x128xf32>
    %4 = arith.cmpf ogt, %1, %3 : vector<2x128xf32>
    %c0_6 = arith.constant 0 : index
    %c2 = arith.constant 2 : index
    %c0_7 = arith.constant 0 : index
    %c0_8 = arith.constant 0 : index
    %5 = vector.load %arg2[%c0_6, %c2, %c0_7, %c0_8] : memref<1x4x2x128xf32, #tpu.memory_space<vmem>>, vector<1x1x2x128xf32>
    %6 = vector.shape_cast %5 : vector<1x1x2x128xf32> to vector<2x128xf32>
    %7 = arith.cmpf oge, %1, %6 : vector<2x128xf32>
    %8 = arith.andi %4, %7 : vector<2x128xi1>
    %c0_9 = arith.constant 0 : index
    %c3 = arith.constant 3 : index
    %c0_10 = arith.constant 0 : index
    %c0_11 = arith.constant 0 : index
    %9 = vector.load %arg2[%c0_9, %c3, %c0_10, %c0_11] : memref<1x4x2x128xf32, #tpu.memory_space<vmem>>, vector<1x1x2x128xf32>
    %10 = vector.shape_cast %9 : vector<1x1x2x128xf32> to vector<2x128xf32>
    %11 = arith.cmpf oge, %1, %10 : vector<2x128xf32>
    %12 = arith.andi %8, %11 : vector<2x128xi1>
    %c0_12 = arith.constant 0 : index
    %c0_13 = arith.constant 0 : index
    %c0_14 = arith.constant 0 : index
    %13 = vector.load %arg3[%c0_12, %c0_13, %c0_14] : memref<1x2x128xi32, #tpu.memory_space<vmem>>, vector<1x2x128xi32>
    %14 = vector.shape_cast %13 : vector<1x2x128xi32> to vector<2x128xi32>
    %c1_i32 = arith.constant 1 : i32
    %15 = vector.broadcast %c1_i32 : i32 to vector<2x128xi32>
    %16 = arith.cmpi eq, %14, %15 : vector<2x128xi32>
    %17 = arith.andi %12, %16 : vector<2x128xi1>
    %18 = arith.extui %17 : vector<2x128xi1> to vector<2x128xi32>
    %19 = vector.shape_cast %18 : vector<2x128xi32> to vector<1x2x128xi32>
    %cst = arith.constant dense<0> : vector<1xi32>
    %20 = vector.multi_reduction <add>, %19, %cst [1, 2] : vector<1x2x128xi32> to vector<1xi32>
    %21 = vector.shape_cast %20 : vector<1xi32> to vector<1x1x1xi32>
    %22 = vector.extract %21[0, 0, 0] : i32 from vector<1x1x1xi32>
    %23 = arith.ori %12, %16 : vector<2x128xi1>
    %24 = arith.extui %23 : vector<2x128xi1> to vector<2x128xi32>
    %25 = vector.shape_cast %24 : vector<2x128xi32> to vector<1x2x128xi32>
    %cst_15 = arith.constant dense<0> : vector<1xi32>
    %26 = vector.multi_reduction <add>, %25, %cst_15 [1, 2] : vector<1x2x128xi32> to vector<1xi32>
    %27 = vector.shape_cast %26 : vector<1xi32> to vector<1x1x1xi32>
    %28 = vector.extract %27[0, 0, 0] : i32 from vector<1x1x1xi32>
    %c0_i32 = arith.constant 0 : i32
    %29 = vector.broadcast %c0_i32 : i32 to vector<1x128xi32>
    %30 = vector.broadcast %22 : i32 to vector<1x128xi32>
    %31 = arith.addi %29, %30 : vector<1x128xi32>
    %c0_16 = arith.constant 0 : index
    %c0_17 = arith.constant 0 : index
    %c0_18 = arith.constant 0 : index
    %32 = vector.load %arg4[%c0_16, %c0_17, %c0_18] : memref<1x1x128xi32, #tpu.memory_space<vmem>>, vector<1x1x128xi32>
    %33 = vector.shape_cast %32 : vector<1x1x128xi32> to vector<1x128xi32>
    %34 = vector.shape_cast %31 : vector<1x128xi32> to vector<1x1x128xi32>
    tpu.vector_store %arg4[%c0_16, %c0_17, %c0_18], %34 {strides = array<i32>} : memref<1x1x128xi32, #tpu.memory_space<vmem>>, vector<1x1x128xi32>,
    %c0_i32_19 = arith.constant 0 : i32
    %35 = vector.broadcast %c0_i32_19 : i32 to vector<1x128xi32>
    %36 = vector.broadcast %28 : i32 to vector<1x128xi32>
    %37 = arith.addi %35, %36 : vector<1x128xi32>
    %c0_20 = arith.constant 0 : index
    %c0_21 = arith.constant 0 : index
    %c0_22 = arith.constant 0 : index
    %38 = vector.load %arg5[%c0_20, %c0_21, %c0_22] : memref<1x1x128xi32, #tpu.memory_space<vmem>>, vector<1x1x128xi32>
    %39 = vector.shape_cast %38 : vector<1x1x128xi32> to vector<1x128xi32>
    %40 = vector.shape_cast %37 : vector<1x128xi32> to vector<1x1x128xi32>
    tpu.vector_store %arg5[%c0_20, %c0_21, %c0_22], %40 {strides = array<i32>} : memref<1x1x128xi32, #tpu.memory_space<vmem>>, vector<1x1x128xi32>,
    return
  }
  func.func @transform_0(%arg0: i32, %arg1: i32) -> (i32, i32, i32, i32) {
    %c0_i32 = arith.constant 0 : i32
    %c0_i32_0 = arith.constant 0 : i32
    %c0_i32_1 = arith.constant 0 : i32
    return %arg0, %c0_i32, %arg1, %c0_i32_0 : i32, i32, i32, i32
  }
  func.func @transform_1(%arg0: i32, %arg1: i32) -> (i32, i32, i32) {
    %c0_i32 = arith.constant 0 : i32
    %c0_i32_0 = arith.constant 0 : i32
    return %arg0, %arg1, %c0_i32 : i32, i32, i32
  }
  func.func @transform_2(%arg0: i32, %arg1: i32) -> (i32, i32, i32) {
    %c1_i32 = arith.constant 1 : i32
    %0 = arith.muli %arg0, %c1_i32 : i32
    %1 = arith.addi %0, %arg1 : i32
    %c0_i32 = arith.constant 0 : i32
    %c0_i32_0 = arith.constant 0 : i32
    %c0_i32_1 = arith.constant 0 : i32
    return %1, %c0_i32, %c0_i32_0 : i32, i32, i32
  }
  func.func @transform_3(%arg0: i32, %arg1: i32) -> (i32, i32, i32) {
    %c1_i32 = arith.constant 1 : i32
    %0 = arith.muli %arg0, %c1_i32 : i32
    %1 = arith.addi %0, %arg1 : i32
    %c0_i32 = arith.constant 0 : i32
    %c0_i32_0 = arith.constant 0 : i32
    %c0_i32_1 = arith.constant 0 : i32
    return %1, %c0_i32, %c0_i32_0 : i32, i32, i32
  }
}

</mosaic_0001>

<bundles_post_ra>
// kernel: tpu_custom_call.1
= control target key start
LH: loop header
LB: loop body
LE: loop exit
PB: predicated region body
PF: predicated region fallthrough
CT: control target
= control target key end

     0   :  { %9 = vsyncpa [#allocation3], 0  ;;  %s1044_s0 = inlined_call_operand.hbm [shape: f32[2,4,2,128], index: 0, kind: input, shape index: {}]   ;;  %s1045_s1 = inlined_call_operand.hbm [shape: s32[2,2,128], index: 1, kind: input, shape index: {}]   ;;  %s1046_s2 = inlined_call_operand.hbm [shape: s32[2,1,128], index: 2, kind: output, shape index: {0}]   ;;  %s1047_s3 = inlined_call_operand.hbm [shape: s32[2,1,128], index: 3, kind: output, shape index: {1}]  }
   0x1   :  { %11 = vsyncpa [#allocation3 + $0x1], 0 }
   0x2   :  { %12 = vsyncpa [#allocation6], 0 }
   0x3   :  { %14 = vsyncpa [#allocation6 + $0x1], 0 }
   0x4   :  { %15 = vsyncpa [#allocation4], 0 }
   0x5   :  { %17 = vsyncpa [#allocation4 + $0x1], 0 }
   0x6   :  { %18 = vsyncpa [#allocation9], 0 }
   0x7   :  { %20 = vsyncpa [#allocation9 + $0x1], 0  ;;  %s790_s12 = smov 0   ;;  %s792_s13 = smov 0  }
   0x8   :  { %s794_s14 = smov 0   ;;  %s796_s15 = smov 0  }
   0x9   :  { %s798_s16 = smov 0   ;;  %s800_s17 = smov 0  }
   0xa LB: > { %s484_s18 = sadd.s32 4294967295, %s761_s17   ;;  %s485_s19 = sadd.s32 4294967294, %s761_s17   ;;  %s761_s17 = sphi %s800_s17, %s26_s17   ;;  %s757_s16 = sphi %s798_s16, %s1066_s16   ;;  %s753_s15 = sphi %s796_s15, %s1065_s15   ;;  %s749_s14 = sphi %s794_s14, %s1064_s14   ;;  %s745_s13 = sphi %s792_s13, %s1063_s13   ;;  %s741_s12 = sphi %s790_s12, %s1062_s12  }
   0xb   : > { %s38_s20 = sadd.s32 1, %s757_s16  ;;  %s47_s21 = sadd.s32 1, %s749_s14 }
   0xc   : > { %p40_p0 = scmp.ge.s32.totalorder %s38_s20, 2  ;;  %p54_p1 = scmp.ne.s32.totalorder %s749_s14, %s745_s13 }
   0xd   : > { %p55_p2 = scmp.eq.s32.totalorder %s761_s17, 0  ;;  %p60_p3 = scmp.ne.s32.totalorder %s745_s13, %s741_s12 }
   0xe   : > { %s1068_s20 = smov (%p40_p0, %s38_s20), 0  ;;  %p61_p5 = scmp.eq.s32.totalorder %s484_s18, 0 }
   0xf   : > { %p831_p4 = por %p55_p2, %p54_p1  ;;  %s42_s23 = ssub.s32 %s757_s16, %s1068_s20 }
  0x10   : > { %p114_p6 = scmp.eq.s32.totalorder %s484_s18, 1  ;;  %p45_p7 = scmp.eq.s32.totalorder %s42_s23, 0 }
  0x11   : > { %p837_p8 = por %p61_p5, %p60_p3  ;;  %p120_p10 = scmp.eq.s32.totalorder %s485_s19, 1 }
  0x12   : > { %p841_p9 = por %p114_p6, %p54_p1  ;;  %p530_p13 = scmp.lt.s32.totalorder %s761_s17, 2 }
  0x13   : > { %s1051_s24 = scalar_select %p837_p8, 1, 0 }
  0x14   : > { %s1052_s25 = scalar_select %p841_p9, 1, 0 }
  0x15   : > { %s846_s26 = scalar_select %p45_p7, %s749_s14, %s47_s21  }
  0x16   : > { %p848_p11 = por %p120_p10, %p60_p3  ;;  %s855_s28 = sand.u32 1, %s749_s14  }
  0x17   : > { %s488_s29 = sshll.u32 %s855_s28, 3  ;;  %s503_s30 = sshll.u32 %s757_s16, 7 }
  0x18   : > { %s1053_s27 = scalar_select %p848_p11, 1, 0 }
  0x19   : > { %s862_s6 = scalar_lea.hbm %s1044_s0, %s503_s30  ;;  %s172_s7 = scalar_lea.vmem [#allocation2], %s488_s29 }
  0x1a   : > { %s180_s8 = sshll.u32 %s172_s7, 4  ;;  %p868_p0 = pnand %p530_p13, %p831_p4  ;;  %s864_s8 = int_to_ptr.vmem [resolvable:$true] %s180_s8 }
  0x1b   : > { %s169_s10 = scalar_lea.sflag [#allocation3], %s855_s28  ;;  %s583_s11 = scalar_lea.hbm %s862_s6, 128 }
  0x1c   : > { %p584_p2 = scmp.ne.s32.totalorder %s862_s6, %s583_s11  ;;  %p585_p3 = pneg %p868_p0 }
  0x1d   : > { %s588_s21 = scalar_lea.hbm %s1044_s0, 256  ;;  %p589_p4 = scmp.lt.u32.totalorder %s862_s6, %s1044_s0 }
  0x1e   : > { %p586_p5 = pnand %p585_p3, %p584_p2  ;;  %p590_p7 = scmp.lt.u32.totalorder %s588_s21, %s583_s11 }
  0x1f   : > { %p592_p13 = scmp.lt.u32.totalorder %s583_s11, %s862_s6 }
  0x20   : > { %p587_p6 = pneg %p586_p5  ;;  %p591_p10 = por %p590_p7, %p589_p4 }
  0x22   : > { %p593_p12 = por %p592_p13, %p591_p10 }
  0x24   : > { %p594_p1 = pnand %p593_p12, %p587_p6 }
  0x26   : > { %597 = shalt.err (!%p594_p1)
}
  0x27   : > { %s598_s29 = scalar_lea.vmem %s864_s8, 128  ;;  %s763_s30 = smov [#allocation2]  }
  0x28   : > { %p599_p2 = scmp.ne.s32.totalorder %s864_s8, %s598_s29  ;;  %s603_s4 = sshll.u32 %s763_s30, 4  ;;  %s604_s4 = int_to_ptr.vmem [resolvable:$false] %s603_s4 }
  0x29   : > { %s605_s5 = scalar_lea.vmem %s604_s4, 256  ;;  %p606_p9 = scmp.lt.s32.totalorder %s864_s8, %s604_s4 }
  0x2a   : > { %p601_p5 = pnand %p599_p2, %p585_p3  ;;  %p607_p4 = scmp.lt.s32.totalorder %s605_s5, %s598_s29 }
  0x2c   : > { %p602_p11 = pneg %p601_p5  ;;  %p608_p7 = por %p607_p4, %p606_p9 }
  0x2e   : > { %p609_p10 = pnand %p608_p7, %p602_p11 }
  0x30   : > { %612 = shalt.err (!%p609_p10)
}
  0x31   : > { %s764_s7 = smov 32   ;;  %s765_s11 = smov 2  }
  0x32   : > { %519 = dma.hbm_to_vmem [thread:$0]  (!%p868_p0), %s862_s6, 128, %s864_s8, %s169_s10, %s764_s7, %s764_s7, %s765_s11  }
  0x33   : > { %p207_p12 = scmp.lt.s32.totalorder %s761_s17, 3  ;;  %s491_s18 = sshll.u32 %s855_s28, 1 }
  0x34   : > { %s492_s19 = sshll.u32 %s757_s16, 5  ;;  %p1055_p9 = scmp.ge.s32.totalorder %s761_s17, 1 }
  0x35   : > { %s913_s29 = scalar_lea.hbm %s1045_s1, %s492_s19  ;;  %s194_s30 = scalar_lea.vmem [#allocation5], %s491_s18 }
  0x36   : > { %p906_p11 = pnand %p1055_p9, %p207_p12  ;;  %s202_s4 = sshll.u32 %s194_s30, 4  ;;  %s203_s4 = int_to_ptr.vmem [resolvable:$true] %s202_s4 }
  0x37   : > { %s191_s6 = scalar_lea.sflag [#allocation6], %s855_s28  ;;  %s613_s8 = scalar_lea.hbm %s913_s29, 32 }
  0x38   : > { %s1056_s21 = scalar_select %p906_p11, 1, 0 }
  0x39   : > { %p614_p1 = scmp.ne.s32.totalorder %s913_s29, %s613_s8  ;;  %s618_s7 = scalar_lea.hbm %s1045_s1, 64 }
  0x3a   : > { %p619_p2 = scmp.lt.u32.totalorder %s913_s29, %s1045_s1  ;;  %p620_p5 = scmp.lt.u32.totalorder %s618_s7, %s613_s8 }
  0x3b   : > { %p616_p6 = pnand %p614_p1, %p585_p3  ;;  %p622_p7 = scmp.lt.u32.totalorder %s613_s8, %s913_s29 }
  0x3c   : > { %p621_p4 = por %p620_p5, %p619_p2 }
  0x3d   : > { %p617_p13 = pneg %p616_p6 }
  0x3e   : > { %p623_p10 = por %p622_p7, %p621_p4 }
  0x40   : > { %p624_p12 = pnand %p623_p10, %p617_p13 }
  0x42   : > { %627 = shalt.err (!%p624_p12)
}
  0x43   : > { %s628_s28 = scalar_lea.vmem %s203_s4, 32  ;;  %s766_s18 = smov [#allocation5]  }
  0x44   : > { %p629_p9 = scmp.ne.s32.totalorder %s203_s4, %s628_s28  ;;  %s633_s22 = sshll.u32 %s766_s18, 4  ;;  %s634_s22 = int_to_ptr.vmem [resolvable:$false] %s633_s22 }
  0x45   : > { %s635_s23 = scalar_lea.vmem %s634_s22, 64  ;;  %p636_p8 = scmp.lt.s32.totalorder %s203_s4, %s634_s22 }
  0x46   : > { %p631_p1 = pnand %p629_p9, %p585_p3  ;;  %p637_p11 = scmp.lt.s32.totalorder %s635_s23, %s628_s28 }
  0x48   : > { %p632_p6 = pneg %p631_p1  ;;  %p638_p2 = por %p637_p11, %p636_p8 }
  0x4a   : > { %p639_p5 = pnand %p638_p2, %p632_p6 }
  0x4c   : > { %642 = shalt.err (!%p639_p5)
}
  0x4d   : > { %522 = dma.hbm_to_vmem [thread:$0]  (!%p868_p0), %s913_s29, 32, %s203_s4, %s191_s6  }
  0x4e   : > { %p1057_p13 = scmp.ne.s32.totalorder %s1056_s21, 0 }
  0x4f   : > { %s938_s30 = sand.u32 (!%p1057_p13), 1, %s745_s13   ;;  %p1058_p3 = scmp.ne.s32.totalorder (!%p1057_p13), %s1051_s24, 0 }
  0x50   : > { %211 = sbr.rel (%p1057_p13) target bundleno = 352 (0x160), region = 28  ;;  %s494_s8 = sshll.u32 (!%p1057_p13), %s938_s30, 3 }
  0x51   : > { %s214_s10 = scalar_lea.sflag (!%p1057_p13), [#allocation3], %s938_s30  ;;  %s217_s5 = scalar_lea.vmem (!%p1057_p13), [#allocation2], %s494_s8 }
  0x57   : > { %724 = dma.done.wait (%p1058_p3), %s214_s10, 128  }
  0x58   : > { %726 = vsyncadd (%p1058_p3), %s214_s10, 4294967168  ;;  %s495_s9 = sshll.u32 %s938_s30, 1  ;;  %s223_s21 = scalar_lea.sflag [#allocation6], %s938_s30 }
  0x59   : > { %s226_s29 = scalar_lea.vmem [#allocation5], %s495_s9 }
  0x5a   : > { %728 = dma.done.wait (%p1058_p3), %s223_s21, 32  }
  0x5b   : > { %730 = vsyncadd (%p1058_p3), %s223_s21, 4294967264  ;;  %v496_v0 = vld [vmem:[%s217_s5 + $0x2] sm:$0x3]  ;;  %v261_v1 = vld [vmem:[%s217_s5] sm:$0x3]  ;;  %vm275_vm6 = vcmask 1041408  }
  0x5c   : > { %v497_v2 = vld [vmem:[%s217_s5 + $0x4] sm:$0x3]  ;;  %vm262_vm0 = vcmp.gt.f32.partialorder %v496_v0, %v261_v1  ;;  %v498_v3 = vld [vmem:[%s217_s5 + $0x6] sm:$0x3]  ;;  %v271_v4 = vld [vmem:[%s226_s29] sm:$0x3] }
  0x5d   : > { %vm265_vm1 = vcmp.ge.f32.partialorder %v496_v0, %v497_v2  ;;  %vm269_vm3 = vcmp.ge.f32.partialorder %v496_v0, %v498_v3  ;;  %vm272_vm4 = vcmp.eq.s32.totalorder %v271_v4, 1  ;;  %v767_v5 = vmov 0   ;;  %s499_s24 = sshll.u32 %s753_s15, 4  ;;  %s250_s4 = scalar_lea.vmem [#allocation7], %s938_s30 }
  0x5e   : > { %vm266_vm2 = vmand %vm262_vm0, %vm265_vm1  ;;  %s340_s6 = sshll.u32 %s250_s4, 4  ;;  %s256_s7 = scalar_lea.vmem [#allocation8], %s938_s30  ;;  %s964_s6 = int_to_ptr.vmem [resolvable:$true] %s340_s6 }
  0x5f   : > { %vm270_vm5 = vmand %vm266_vm2, %vm269_vm3  ;;  %s354_s11 = sshll.u32 %s256_s7, 4  ;;  %s962_s18 = scalar_lea.hbm %s1046_s2, %s499_s24  ;;  %s966_s11 = int_to_ptr.vmem [resolvable:$true] %s354_s11 }
  0x60   : > { %vm273_vm7 = vmand %vm270_vm5, %vm272_vm4  ;;  %s323_s23 = scalar_lea.sflag [#allocation4], %s938_s30  ;;  %s643_s8 = scalar_lea.vmem %s964_s6, 16 }
  0x61   : > { %v274_v6 = vsel %vm273_vm7, 1, %v767_v5  ;;  %vm296_vm8 = vmor %vm270_vm5, %vm272_vm4  ;;  %p644_p8 = scmp.ne.s32.totalorder %s964_s6, %s643_s8  ;;  %p1059_p0 = scmp.ne.s32.totalorder %s1052_s25, 0 }
  0x62   : > { %v276_v7 = vsel %vm275_vm6, %v274_v6, 0  ;;  %v297_v8 = vsel %vm296_vm8, 1, %v767_v5  ;;  %s768_s10 = smov [#allocation7]  }
  0x63   : > { %v278_v9 = vshrl.u32 %v276_v7, 16  ;;  %v277_v10 = vand.u32 65535, %v276_v7  ;;  %v298_v11 = vsel %vm275_vm6, %v297_v8, 0  ;;  %p645_p11 = pnand %p644_p8, %p1059_p0  ;;  %s647_s5 = sshll.u32 %s768_s10, 4  ;;  %s648_s5 = int_to_ptr.vmem [resolvable:$false] %s647_s5 }
  0x64   : > { %v300_v12 = vshrl.u32 %v298_v11, 16  ;;  %v299_v13 = vand.u32 65535, %v298_v11  ;;  %s649_s9 = scalar_lea.vmem %s648_s5, 32  ;;  %p650_p7 = scmp.lt.s32.totalorder %s964_s6, %s648_s5 }
  0x65   : > { %v280_v14 = vcvt.s32.f32 %v278_v9  ;;  %v279_v15 = vcvt.s32.f32 %v277_v10  ;;  %p646_p4 = pneg %p645_p11  ;;  %p651_p10 = scmp.lt.s32.totalorder %s649_s9, %s643_s8 }
  0x66   : > { %v302_v16 = vcvt.s32.f32 %v300_v12  ;;  %v301_v17 = vcvt.s32.f32 %v299_v13 }
  0x67   : > { %283 = vadd.xlane.f32.xlu0 %v280_v14  ;;  %281 = vadd.xlane.f32.xlu1 %v279_v15  ;;  %p652_p12 = por %p651_p10, %p650_p7 }
  0x69   : > { %p653_p9 = pnand %p652_p12, %p646_p4 }
  0x6b   : > { %305 = vadd.xlane.f32.xlu0 %v302_v16  ;;  %303 = vadd.xlane.f32.xlu1 %v301_v17 }
  0xf4   : > { %v284_v18 = vpop.xlane.xlu0 %283  ;;  %v282_v19 = vpop.xlane.xlu1 %281 }
  0xf5   : > { %v286_v20 = vcvt.f32.s32 %v284_v18  ;;  %v285_v21 = vcvt.f32.s32 %v282_v19 }
  0xf7   : > { %v287_v22 = vshll.u32 %v286_v20, 16 }
  0xf8   : > { %v306_v23 = vpop.xlane.xlu0 %305  ;;  %v304_v24 = vpop.xlane.xlu1 %303 }
  0xf9   : > { %v288_v25 = vadd.s32 %v287_v22, %v285_v21  ;;  %v308_v26 = vcvt.f32.s32 %v306_v23  ;;  %v307_v27 = vcvt.f32.s32 %v304_v24 }
  0xfb   : > { %v289_v28 = vrot.slane %v288_v25, 4  ;;  %v309_v29 = vshll.u32 %v308_v26, 16 }
  0xfd   : > { %v310_v30 = vadd.s32 %v309_v29, %v307_v27  ;;  %v290_v31 = vadd.s32 %v289_v28, %v288_v25 }
  0xff   : > { %v311_v32 = vrot.slane %v310_v30, 4  ;;  %v291_v33 = vrot.slane %v290_v31, 2 }
 0x101   : > { %v312_v34 = vadd.s32 %v311_v32, %v310_v30  ;;  %v292_v35 = vadd.s32 %v291_v33, %v290_v31 }
 0x103   : > { %v293_v36 = vrot.slane %v292_v35, 1  ;;  %v313_v37 = vrot.slane %v312_v34, 2 }
 0x105   : > { %v294_v38 = vadd.s32 %v293_v36, %v292_v35  ;;  %v314_v39 = vadd.s32 %v313_v37, %v312_v34 }
 0x107   : > { %504 = vpush %v294_v38  ;;  %v315_v40 = vrot.slane %v314_v39, 1 }
 0x109   : > { %v316_v41 = vadd.s32 %v315_v40, %v314_v39 }
 0x10b   : > { %506 = vpush %v316_v41 }
 0x138   : > { %s505_s22 = spop %504 }
 0x139   : > { %v318_v42 = vstv %s505_s22 }
 0x13a   : > { %319 = vst [vmem:[%s250_s4] sm:$0x1] %v318_v42 }
 0x13b   : > { %656 = shalt.err (!%p653_p9)
}
 0x13c   : > { %s657_s21 = scalar_lea.hbm %s962_s18, 16  ;;  %s661_s19 = scalar_lea.hbm %s1046_s2, 32 }
 0x13d   : > { %p658_p1 = scmp.ne.s32.totalorder %s962_s18, %s657_s21  ;;  %p662_p5 = scmp.lt.u32.totalorder %s962_s18, %s1046_s2 }
 0x13e   : > { %p663_p13 = scmp.lt.u32.totalorder %s661_s19, %s657_s21  ;;  %p665_p8 = scmp.lt.u32.totalorder %s657_s21, %s962_s18 }
 0x13f   : > { %p659_p6 = pnand %p658_p1, %p1059_p0 }
 0x140   : > { %p664_p3 = por %p663_p13, %p662_p5 }
 0x141   : > { %p660_p2 = pneg %p659_p6 }
 0x142   : > { %p666_p11 = por %p665_p8, %p664_p3 }
 0x144   : > { %p667_p4 = pnand %p666_p11, %p660_p2 }
 0x146   : > { %670 = shalt.err (!%p667_p4)
}
 0x147   : > { %512 = dma.vmem_to_hbm [thread:$0]  (%p1059_p0), %s964_s6, 16, %s962_s18, %s323_s23  }
 0x148   : > { %s507_s8 = spop %506  ;;  %s995_s9 = scalar_lea.hbm %s1047_s3, %s499_s24 }
 0x149   : > { %v320_v43 = vstv %s507_s8  ;;  %s327_s21 = scalar_lea.sflag [#allocation9], %s938_s30  ;;  %s671_s29 = scalar_lea.vmem %s966_s11, 16 }
 0x14a   : > { %321 = vst [vmem:[%s256_s7] sm:$0x1] %v320_v43  ;;  %p672_p7 = scmp.ne.s32.totalorder %s966_s11, %s671_s29  ;;  %s769_s4 = smov [#allocation8]  }
 0x14b   : > { %s675_s19 = sshll.u32 %s769_s4, 4  ;;  %s676_s19 = int_to_ptr.vmem [resolvable:$false] %s675_s19 }
 0x14c   : > { %p673_p10 = pnand %p672_p7, %p1059_p0  ;;  %s677_s6 = scalar_lea.vmem %s676_s19, 32 }
 0x14d   : > { %p678_p9 = scmp.lt.s32.totalorder %s966_s11, %s676_s19  ;;  %p679_p1 = scmp.lt.s32.totalorder %s677_s6, %s671_s29 }
 0x14e   : > { %p674_p12 = pneg %p673_p10 }
 0x14f   : > { %p680_p6 = por %p679_p1, %p678_p9 }
 0x151   : > { %p681_p2 = pnand %p680_p6, %p674_p12 }
 0x153   : > { %684 = shalt.err (!%p681_p2)
}
 0x154   : > { %s685_s15 = scalar_lea.hbm %s995_s9, 16  ;;  %s689_s7 = scalar_lea.hbm %s1047_s3, 32 }
 0x155   : > { %p686_p5 = scmp.ne.s32.totalorder %s995_s9, %s685_s15  ;;  %p690_p8 = scmp.lt.u32.totalorder %s995_s9, %s1047_s3 }
 0x156   : > { %p691_p11 = scmp.lt.u32.totalorder %s689_s7, %s685_s15  ;;  %p693_p7 = scmp.lt.u32.totalorder %s685_s15, %s995_s9 }
 0x157   : > { %p687_p13 = pnand %p686_p5, %p1059_p0 }
 0x158   : > { %p692_p4 = por %p691_p11, %p690_p8 }
 0x159   : > { %p688_p3 = pneg %p687_p13 }
 0x15a   : > { %p694_p10 = por %p693_p7, %p692_p4 }
 0x15c   : > { %p695_p12 = pnand %p694_p10, %p688_p3 }
 0x15e   : > { %698 = shalt.err (!%p695_p12)
}
 0x15f   : > { %513 = dma.vmem_to_hbm [thread:$0]  (%p1059_p0), %s966_s11, 16, %s995_s9, %s327_s21  }
 0x160 PF: > { %s366_s28 = sand.u32 1, %s741_s12   ;;  %p1060_p9 = scmp.ne.s32.totalorder %s1053_s27, 0 }
 0x161   : > { %p1061_p1 = scmp.ge.s32.totalorder %s761_s17, 2  ;;  %s367_s22 = scalar_lea.sflag [#allocation4], %s366_s28 }
 0x163   : > { %p524_p6 = pnand %p1061_p1, %p1060_p9 }
 0x165   : > { %732 = dma.done.wait (!%p524_p6), %s367_s22, 16  }
 0x166   : > { %734 = vsyncadd (!%p524_p6), %s367_s22, 4294967280  ;;  %s375_s8 = scalar_lea.sflag [#allocation9], %s366_s28 }
 0x167   : > { %736 = dma.done.wait (!%p524_p6), %s375_s8, 16  }
 0x168   : > { %738 = vsyncadd (!%p524_p6), %s375_s8, 4294967280  ;;  %s26_s17 = sadd.s32 1, %s761_s17   ;;  %s1062_s12 = smov %s745_s13 }
 0x169   : > { %p23_p2 = scmp.ge.s32.totalorder %s26_s17, 4   ;;  %s1063_s13 = smov %s749_s14 }
 0x16a   : > { %s1064_s14 = smov %s846_s26  ;;  %s1065_s15 = smov %s757_s16 }
 0x16b   : > { %s1066_s16 = smov %s1068_s20  ;;  %25 = sbr.rel (!%p23_p2) target bundleno = 10 (0xa), region = 106 }
 0x172   :  { %379 = vsyncpa [#allocation3], 1 }
 0x173   :  { %381 = vsyncpa [#allocation3 + $0x1], 1 }
 0x174   :  { %382 = vsyncpa [#allocation6], 1 }
 0x175   :  { %384 = vsyncpa [#allocation6 + $0x1], 1 }
 0x176   :  { %385 = vsyncpa [#allocation4], 1 }
 0x177   :  { %387 = vsyncpa [#allocation4 + $0x1], 1 }
 0x178   :  { %388 = vsyncpa [#allocation9], 1 }
 0x179   :  { %390 = vsyncpa [#allocation9 + $0x1], 1 }

</bundles_post_ra>
